<compile_context>
chip_gen: v7x
topology: tpu7x:2x2x1
jax: 0.10.0
libtpu: 0.0.40
codegen_flags: <defaults>
</compile_context>

<pallas_src>
import functools

import jax
import jax.numpy as jnp
from jax.experimental import pallas as pl
from jax.experimental.pallas import tpu as pltpu


# --------------------------------------------------------------------------
# Kernels
# --------------------------------------------------------------------------
def _activate(h, activation):
    if activation == "relu":
        return jnp.maximum(h, 0.0)
    if activation == "sigmoid":
        return jax.nn.sigmoid(h)
    return h


def transform_kernel(x_ref, w_ref, o_ref):
    """XW row tile: o = x_tile @ W  (f32 MXU accumulate, bf16 out)."""
    o_ref[...] = jnp.dot(
        x_ref[...], w_ref[...], preferred_element_type=jnp.float32
    ).astype(o_ref.dtype)


def aggregate_single_kernel(a_ref, xw_ref, b_ref, o_ref, *, activation):
    """o_tile = act(A[i_tile, :] @ XW + b) -- full reduction in one MXU call.

    a_ref  : (tm, N)  f32 adjacency row tile (cast to bf16 in-kernel)
    xw_ref : (N, Fp)  bf16 transformed features, VMEM-resident (fetched once)
    b_ref  : (1, Fp)  f32 bias (lane-dense padded)
    o_ref  : (tm, Fp) output tile (no scratch, single store)
    """
    a = a_ref[...].astype(jnp.bfloat16)
    h = jnp.dot(a, xw_ref[...], preferred_element_type=jnp.float32) + b_ref[...]
    o_ref[...] = _activate(h, activation).astype(o_ref.dtype)


def aggregate_ktiled_kernel(a_ref, xw_ref, b_ref, o_ref, acc_ref, *,
                            activation, xw_resident):
    """K-tiled aggregation with an f32 VMEM accumulator.

    xw_resident=True : xw_ref is the full (N, Fp) array held in VMEM; the
                       k-th (tk, Fp) chunk is sliced in-kernel (aligned slice).
    xw_resident=False: xw_ref is the (tk, Fp) K-tile streamed from HBM.
    """
    k = pl.program_id(1)

    @pl.when(k == 0)
    def _():
        acc_ref[...] = jnp.zeros_like(acc_ref)

    a = a_ref[...].astype(jnp.bfloat16)          # f32 HBM stream -> bf16 MXU
    if xw_resident:
        tk = a_ref.shape[1]
        start = pl.multiple_of(k * tk, tk)
        xw = xw_ref[pl.ds(start, tk), :]
    else:
        xw = xw_ref[...]
    acc_ref[...] += jnp.dot(a, xw, preferred_element_type=jnp.float32)

    @pl.when(k == pl.num_programs(1) - 1)
    def _():
        h = acc_ref[...] + b_ref[...]
        o_ref[...] = _activate(h, activation).astype(o_ref.dtype)


# --------------------------------------------------------------------------
# Layer wrapper
# --------------------------------------------------------------------------
def _pad_to_lanes(f, lanes=128):
    return ((f + lanes - 1) // lanes) * lanes


def _choose_tile(n, pref):
    t = min(pref, n)
    while t > 8 and n % t != 0:
        t //= 2
    return t


def gcn_layer(adj, x, w, b, *, activation, out_dtype,
              tm_pref=1024, tk_pref=1024,
              max_resident_xw_bytes=8 * 1024 * 1024):
    """act(adj @ (x @ w) + b) with F_out padded to a 128-lane multiple.

    Returns an (N, Fp) array whose padding columns stay zero (relu) or
    sigmoid(0)=0.5 (sigmoid) -- caller slices to the real F_out right away.
    """
    n = adj.shape[0]
    f_x = x.shape[1]
    f_in, f_out = w.shape
    fp = _pad_to_lanes(f_out)

    tm = _choose_tile(n, tm_pref)
    # Keep >= 2 row tiles so both v7x TensorCores get work on the parallel axis.
    if tm == n and tm % 16 == 0:
        tm //= 2
    tk = _choose_tile(n, tk_pref)
    # TODO(synk): ragged N (not divisible by tiles) needs padding / masked tiles.
    assert n % tm == 0 and n % tk == 0 and tm % 8 == 0, "N must tile cleanly"

    # Lane-dense padded weight / bias (zeros outside the real block, so the
    # padding columns stay exactly zero through both layers).
    w_p = jnp.zeros((f_x, fp), x.dtype).at[:f_in, :f_out].set(w.astype(x.dtype))
    b_p = jnp.zeros((1, fp), jnp.float32).at[0, :f_out].set(b.astype(jnp.float32))

    vmem_limit = 32 * 1024 * 1024

    # ---- Stage 1: XW = X @ W  (hoisted; computed exactly once per layer) ---
    xw = pl.pallas_call(
        transform_kernel,
        out_shape=jax.ShapeDtypeStruct((n, fp), jnp.bfloat16),
        grid_spec=pltpu.PrefetchScalarGridSpec(
            num_scalar_prefetch=0,
            grid=(n // tm,),
            in_specs=[
                pl.BlockSpec((tm, f_x), lambda i: (i, 0)),   # X / h row tile
                pl.BlockSpec((f_x, fp), lambda i: (0, 0)),   # full padded W
            ],
            out_specs=pl.BlockSpec((tm, fp), lambda i: (i, 0)),
        ),
        compiler_params=pltpu.CompilerParams(
            dimension_semantics=("parallel",),
            vmem_limit_bytes=vmem_limit),
        cost_estimate=pl.CostEstimate(
            flops=2 * n * f_x * fp,
            transcendentals=0,
            bytes_accessed=(n * f_x + f_x * fp) * x.dtype.itemsize + 2 * n * fp),
    )(x, w_p)

    # ---- Stage 2: act(A @ XW + b) -------------------------------------------
    n_k = n // tk
    out_shape = jax.ShapeDtypeStruct((n, fp), out_dtype)
    out_bytes = n * fp * jnp.dtype(out_dtype).itemsize
    trans = n * fp if activation == "sigmoid" else 0

    if n_k == 1:
        # Whole reduction fits one MXU call per row tile: no K axis, no scratch.
        kernel = functools.partial(aggregate_single_kernel, activation=activation)
        out = pl.pallas_call(
            kernel,
            out_shape=out_shape,
            grid_spec=pltpu.PrefetchScalarGridSpec(
                num_scalar_prefetch=0,
                grid=(n // tm,),
                in_specs=[
                    pl.BlockSpec((tm, n), lambda i: (i, 0)),   # A row tile (f32)
                    pl.BlockSpec((n, fp), lambda i: (0, 0)),   # XW, fetched once
                    pl.BlockSpec((1, fp), lambda i: (0, 0)),   # bias
                ],
                out_specs=pl.BlockSpec((tm, fp), lambda i: (i, 0)),
            ),
            compiler_params=pltpu.CompilerParams(
                dimension_semantics=("parallel",),
                vmem_limit_bytes=vmem_limit),
            cost_estimate=pl.CostEstimate(
                flops=2 * n * n * fp,
                transcendentals=trans,
                bytes_accessed=4 * n * n + 2 * n * fp + 4 * fp + out_bytes),
        )(adj, xw, b_p)
    else:
        # K-tiled over adjacency columns; XW held fully resident in VMEM when
        # it fits (fetched once), otherwise streamed per K step (fallback).
        xw_resident = 2 * (n * fp * 2) <= max_resident_xw_bytes
        if xw_resident:
            xw_spec = pl.BlockSpec((n, fp), lambda i, k: (0, 0))
            xw_bytes = 2 * n * fp
        else:
            # TODO(synk): for huge N, fuse X@W into the aggregation instead of
            # round-tripping XW through HBM.
            xw_spec = pl.BlockSpec((tk, fp), lambda i, k: (k, 0))
            xw_bytes = 2 * n * fp * (n // tm)
        kernel = functools.partial(aggregate_ktiled_kernel,
                                   activation=activation,
                                   xw_resident=xw_resident)
        out = pl.pallas_call(
            kernel,
            out_shape=out_shape,
            grid_spec=pltpu.PrefetchScalarGridSpec(
                num_scalar_prefetch=0,
                grid=(n // tm, n_k),
                in_specs=[
                    pl.BlockSpec((tm, tk), lambda i, k: (i, k)),  # A tile (f32)
                    xw_spec,
                    pl.BlockSpec((1, fp), lambda i, k: (0, 0)),   # bias
                ],
                out_specs=pl.BlockSpec((tm, fp), lambda i, k: (i, 0)),
                scratch_shapes=[pltpu.VMEM((tm, fp), jnp.float32)],
            ),
            compiler_params=pltpu.CompilerParams(
                dimension_semantics=("parallel", "arbitrary"),
                vmem_limit_bytes=vmem_limit),
            cost_estimate=pl.CostEstimate(
                flops=2 * n * n * fp,
                transcendentals=trans,
                bytes_accessed=4 * n * n + xw_bytes + 4 * fp + out_bytes),
        )(adj, xw, b_p)
    return out


def gcn_forward(x, adj, params, **kw):
    """Full GCN forward (inference / eval mode). adj stays f32 in HBM."""
    w1, b1, w2, b2 = params
    h = gcn_layer(adj, x, w1, b1, activation="relu",
                  out_dtype=jnp.bfloat16, **kw)
    # TODO(synk): F.dropout(p=0.5, training=self.training) is identity in eval
    # mode; training-mode stochastic dropout is not implemented here.
    out = gcn_layer(adj, h, w2, b2, activation="sigmoid",
                    out_dtype=jnp.float32, **kw)
    return out[:, : w2.shape[1]]           # strip lane-padding columns


# --------------------------------------------------------------------------
# Test harness
# --------------------------------------------------------------------------
def glorot(key, shape):
    fan_in, fan_out = shape
    limit = jnp.sqrt(6.0 / (fan_in + fan_out))
    return jax.random.uniform(key, shape, jnp.float32, -limit, limit)


def make_normalized_adj(key, n):
    """Dense symmetric normalized adjacency: D^-1/2 (A + I) D^-1/2."""
    a = (jax.random.uniform(key, (n, n)) < 0.1).astype(jnp.float32)
    a = jnp.maximum(a, a.T)                      # symmetrize
    a = jnp.maximum(a, jnp.eye(n))               # add self loops (set_diag)
    deg = a.sum(axis=1)
    dinv = jnp.where(deg > 0, deg ** -0.5, 0.0)
    return dinv[:, None] * a * dinv[None, :]


if __name__ == "__main__":
    key = jax.random.PRNGKey(0)
    k_x, k_adj, k_w1, k_w2 = jax.random.split(key, 4)

    # Small synthetic "yelp-like" graph: 512 nodes, 32 input feats,
    # 64 hidden units, 8 (multi-label) classes.
    num_nodes = 512
    in_channels = 32
    hidden_channels = 64
    class_channels = 8

    x = jax.random.normal(k_x, (num_nodes, in_channels), jnp.float32)
    adj = make_normalized_adj(k_adj, num_nodes)

    w1 = glorot(k_w1, (in_channels, hidden_channels))
    b1 = jnp.zeros((hidden_channels,), jnp.float32)
    w2 = glorot(k_w2, (hidden_channels, class_channels))
    b2 = jnp.zeros((class_channels,), jnp.float32)
    params = (w1, b1, w2, b2)

    # Reference in plain f32 JAX.  bf16 adjacency/XW/h with f32 accumulation
    # -> relaxed tolerance.
    ref_h = jnp.maximum(adj @ (x @ w1) + b1, 0.0)
    ref = jax.nn.sigmoid(adj @ (ref_h @ w2) + b2)

    # Default config: single-K aggregation path (tk == N), XW fully resident.
    out = jax.block_until_ready(gcn_forward(x, adj, params))
    assert out.shape == (num_nodes, class_channels)
    assert jnp.allclose(out, ref, atol=2e-2, rtol=2e-2), (
        float(jnp.max(jnp.abs(out - ref))))

    # Exercise the K-tiled path with VMEM-resident XW.
    out_kt = jax.block_until_ready(
        gcn_forward(x, adj, params, tm_pref=128, tk_pref=128))
    assert jnp.allclose(out_kt, ref, atol=2e-2, rtol=2e-2), (
        float(jnp.max(jnp.abs(out_kt - ref))))

    # Exercise the K-tiled path with the streamed-XW fallback.
    out_fb = jax.block_until_ready(
        gcn_forward(x, adj, params, tm_pref=128, tk_pref=128,
                    max_resident_xw_bytes=0))
    assert jnp.allclose(out_fb, ref, atol=2e-2, rtol=2e-2), (
        float(jnp.max(jnp.abs(out_fb - ref))))

    print("KERNEL_OK")
</pallas_src>

<mosaic_0001>
module attributes {stable_mosaic.version = 11 : i64} {
  func.func @transform_kernel(%arg0: i32, %arg1: memref<256x32xf32, #tpu.memory_space<vmem>>, %arg2: memref<32x128xf32, #tpu.memory_space<vmem>>, %arg3: memref<256x128xbf16, #tpu.memory_space<vmem>>) attributes {dimension_semantics = [#tpu.dimension_semantics<parallel>], iteration_bounds = array<i64: 2>, scalar_prefetch = 0 : i64, scratch_operands = 0 : i64, tpu.core_type = #tpu.core_type<tc>, window_params = [{transform_indices = @transform_0, window_bounds = array<i64: 256, 32>}, {pipeline_mode = #tpu.pipeline_mode<synchronous>, transform_indices = @transform_1, window_bounds = array<i64: 32, 128>}, {transform_indices = @transform_2, window_bounds = array<i64: 256, 128>}]} {
    %c0 = arith.constant 0 : index
    %c0_0 = arith.constant 0 : index
    %0 = vector.load %arg1[%c0, %c0_0] : memref<256x32xf32, #tpu.memory_space<vmem>>, vector<256x32xf32>
    %c0_1 = arith.constant 0 : index
    %c0_2 = arith.constant 0 : index
    %1 = vector.load %arg2[%c0_1, %c0_2] : memref<32x128xf32, #tpu.memory_space<vmem>>, vector<32x128xf32>
    %cst = arith.constant dense<0.000000e+00> : vector<256x128xf32>
    %2 = tpu.matmul %0, %1, %cst {dimension_numbers = #tpu.dot_dimension_numbers<[1], [0], [0], [1], [0, 0, 1, 1], [], []>} : vector<256x32xf32>, vector<32x128xf32>, vector<256x128xf32> -> vector<256x128xf32>
    %3 = arith.truncf %2 : vector<256x128xf32> to vector<256x128xbf16>
    %c0_3 = arith.constant 0 : index
    %c0_4 = arith.constant 0 : index
    %4 = vector.load %arg3[%c0_3, %c0_4] : memref<256x128xbf16, #tpu.memory_space<vmem>>, vector<256x128xbf16>
    tpu.vector_store %arg3[%c0_3, %c0_4], %3 {strides = array<i32>} : memref<256x128xbf16, #tpu.memory_space<vmem>>, vector<256x128xbf16>,
    return
  }
  func.func @transform_0(%arg0: i32) -> (i32, i32) {
    %c0_i32 = arith.constant 0 : i32
    %c0_i32_0 = arith.constant 0 : i32
    return %arg0, %c0_i32 : i32, i32
  }
  func.func @transform_1(%arg0: i32) -> (i32, i32) {
    %c0_i32 = arith.constant 0 : i32
    %c0_i32_0 = arith.constant 0 : i32
    %c0_i32_1 = arith.constant 0 : i32
    return %c0_i32, %c0_i32_0 : i32, i32
  }
  func.func @transform_2(%arg0: i32) -> (i32, i32) {
    %c0_i32 = arith.constant 0 : i32
    %c0_i32_0 = arith.constant 0 : i32
    return %arg0, %c0_i32 : i32, i32
  }
}

</mosaic_0001>

<bundles_post_ra>
// kernel: tpu_custom_call.1
= control target key start
LH: loop header
LB: loop body
LE: loop exit
PB: predicated region body
PF: predicated region fallthrough
CT: control target
= control target key end

     0   :  { %7 = vsyncpa [#allocation3], 0  ;;  %s1373_s0 = inlined_call_operand.vmem [shape: f32[512,32], index: 0, kind: input, shape index: {}]   ;;  %s1374_s1 = inlined_call_operand.vmem [shape: f32[32,128], index: 1, kind: input, shape index: {}]   ;;  %s1375_s2 = inlined_call_operand.hbm [shape: bf16[512,128], index: 2, kind: output, shape index: {}]  }
   0x1   :  { %9 = vsyncpa [#allocation3 + $0x1], 0  ;;  %s1170_s9 = smov 0   ;;  %s1172_s10 = smov 0  }
   0x2   :  { %s1174_s11 = smov 0   ;;  %s1176_s12 = smov 0  }
   0x3 LB: > { %s1191_s13 = sadd.s32 4294967295, %s1150_s12   ;;  %s739_s14 = sadd.s32 4294967294, %s1150_s12   ;;  %s1150_s12 = sphi %s1176_s12, %s1381_s12   ;;  %s1146_s11 = sphi %s1174_s11, %s1380_s11   ;;  %s1142_s10 = sphi %s1172_s10, %s1379_s10   ;;  %s1138_s9 = sphi %s1170_s9, %s1378_s9  }
   0x4   : > { %s1195_s15 = sadd.s32 1, %s1150_s12   ;;  %s69_s16 = sadd.s32 1, %s1146_s11 }
   0x5   : > { %s66_s17 = ssub.s32 %s1150_s12, %s1195_s15  ;;  %p79_p0 = scmp.ne.s32.totalorder %s1146_s11, %s1142_s10 }
   0x6   : > { %p67_p1 = scmp.eq.s32.totalorder %s66_s17, 0  ;;  %p80_p2 = scmp.eq.s32.totalorder %s1191_s13, 1 }
   0x7   : > { %p85_p3 = scmp.ne.s32.totalorder %s1142_s10, %s1138_s9  ;;  %p86_p4 = scmp.eq.s32.totalorder %s739_s14, 1 }
   0x8   : > { %s1206_s18 = scalar_select %p67_p1, %s1146_s11, %s69_s16  }
   0x9   : > { %p1208_p5 = por %p80_p2, %p79_p0  ;;  %p1212_p6 = por %p86_p4, %p85_p3 }
   0xa   : > { %p742_p7 = scmp.ge.s32.totalorder %s1150_s12, 1  ;;  %p116_p8 = scmp.lt.s32.totalorder %s1150_s12, 3 }
   0xc   : > { %p117_p9 = pnand %p742_p7, %p116_p8 }
   0xd   : > { %v177_v0 = vld [vmem:[%s1374_s1] sm:$0xff] (!%p117_p9)  ;;  %v178_v1 = vld [vmem:[%s1374_s1 + $0x8] sm:$0xff] (!%p117_p9)  ;;  %v179_v2 = vld [vmem:[%s1374_s1 + $0x10] sm:$0xff] (!%p117_p9)  ;;  %s744_s27 = sshll.u32 (!%p117_p9), %s1191_s13, 5  ;;  %vm181_vm0 = vcmask (!%p117_p9), 261120   ;;  %s135_s6 = sand.u32 (!%p117_p9), 1, %s1142_s10  }
   0xe   : > { %120 = sbr.rel (%p117_p9) target bundleno = 285 (0x11d), region = 28  ;;  %v1035_v3 = vpack.c.bf16 (!%p117_p9), %v178_v1, %v177_v0  ;;  %v180_v4 = vld [vmem:[%s1374_s1 + $0x18] sm:$0xff] (!%p117_p9)  ;;  %p139_p10 = scmp.lt.s32.totalorder (!%p117_p9), %s744_s27, 63 }
   0xf   : > { %v1039_v5 = vpack.c.bf16 (!%p117_p9), %v180_v4, %v179_v2  ;;  %s743_s7 = sshll.u32 (!%p117_p9), %s135_s6, 7  ;;  %s847_s14 = sshll.u32 (!%p117_p9), %s1191_s13, 11 }
  0x10   : > { %1036 = vmatprep.subr.bf16.mxu0 (!%p117_p9), %v1035_v3  ;;  %1043 = vmatprep.subr.bf16.mxu1 (!%p117_p9), %v1035_v3  ;;  %s1303_s8 = scalar_lea.vmem (!%p117_p9), [#allocation2], %s743_s7  ;;  %s1324_s22 = scalar_lea.hbm (!%p117_p9), %s1375_s2, %s847_s14 }
  0x11   : > { %1038 = vmatpush3.bf16.msra.mxu0 (!%p117_p9), %v1035_v3  ;;  %1045 = vmatpush3.bf16.msra.mxu1 (!%p117_p9), %v1035_v3  ;;  %s677_s16 = sshll.u32 (!%p117_p9), %s1303_s8, 4  ;;  %s1332_s13 = scalar_lea.sflag (!%p117_p9), [#allocation3], %s135_s6  ;;  %s1326_s16 = int_to_ptr.vmem [resolvable:$true] %s677_s16 }
  0x12   : > { %1040 = vmatprep.subr.bf16.mxu0 (!%p117_p9), %v1039_v5  ;;  %1044 = vmatprep.subr.bf16.mxu1 (!%p117_p9), %v1039_v5  ;;  %s1088_s23 = scalar_lea.vmem (!%p117_p9), %s1326_s16, 2048  ;;  %s1152_s24 = smov (!%p117_p9), [#allocation2]  }
  0x13   : > { %p1089_p11 = scmp.ne.s32.totalorder (!%p117_p9), %s1326_s16, %s1088_s23  ;;  %s1092_s25 = sshll.u32 (!%p117_p9), %s1152_s24, 4  ;;  %s1093_s25 = int_to_ptr.vmem [resolvable:$false] %s1092_s25 }
  0x14   : > { %s1094_s26 = scalar_lea.vmem (!%p117_p9), %s1093_s25, 4096  ;;  %p1095_p0 = scmp.lt.s32.totalorder (!%p117_p9), %s1326_s16, %s1093_s25 }
  0x15   : > { %s1383_s27 = smov (!%p139_p10, %s744_s27), 63  ;;  %1042 = vmatpush3.bf16.msra.mxu0 %v1039_v5  ;;  %1046 = vmatpush3.bf16.msra.mxu1 %v1039_v5  ;;  %p1090_p12 = pnand %p1089_p11, %p1208_p5 }
  0x16   : > { %s745_s30 = sshll.u32 %s1383_s27, 3  ;;  %p1096_p1 = scmp.lt.s32.totalorder %s1094_s26, %s1088_s23 }
  0x17   : > { %s1234_s5 = scalar_lea.vmem %s1373_s0, %s745_s30  ;;  %p1091_p13 = pneg %p1090_p12 }
  0x18   : > { %v145_v6 = vld [vmem:[%s1234_s5] sm:$0xff]  ;;  %v146_v8 = vld [vmem:[%s1234_s5 + $0x8] sm:$0xff]  ;;  %v147_v10 = vld [vmem:[%s1234_s5 + $0x10] sm:$0xff]  ;;  %p1097_p2 = por %p1096_p1, %p1095_p0 }
  0x19   : > { %v161_v7 = vld [vmem:[%s1234_s5 + $0x80] sm:$0xff]  ;;  %v162_v9 = vld [vmem:[%s1234_s5 + $0x88] sm:$0xff]  ;;  %987 = vmatprep.mubr.msk.f32.mxu0 %vm181_vm0, %v145_v6  ;;  %v163_v11 = vld [vmem:[%s1234_s5 + $0x90] sm:$0xff] }
  0x1a   : > { %1011 = vmatprep.mubr.msk.f32.mxu1 %vm181_vm0, %v161_v7  ;;  %988 = vmatmul.mubr.msk.f32.vlgmr.msra.gmra.mrb[0].mxu0 %vm181_vm0, %v146_v8  ;;  %v148_v12 = vld [vmem:[%s1234_s5 + $0x18] sm:$0xff]  ;;  %v149_v14 = vld [vmem:[%s1234_s5 + $0x20] sm:$0xff]  ;;  %v150_v16 = vld [vmem:[%s1234_s5 + $0x28] sm:$0xff]  ;;  %p1098_p3 = pnand %p1097_p2, %p1091_p13 }
  0x1b   : > { %1012 = vmatmul.mubr.msk.f32.vlgmr.msra.gmra.mrb[0].mxu1 %vm181_vm0, %v162_v9  ;;  %990 = vmatprep.mubr.msk.f32.mxu0 %vm181_vm0, %v147_v10  ;;  %v164_v13 = vld [vmem:[%s1234_s5 + $0x98] sm:$0xff]  ;;  %v165_v15 = vld [vmem:[%s1234_s5 + $0xa0] sm:$0xff]  ;;  %v166_v17 = vld [vmem:[%s1234_s5 + $0xa8] sm:$0xff] }
  0x1c   : > { %1014 = vmatprep.mubr.msk.f32.mxu1 %vm181_vm0, %v163_v11  ;;  %v151_v18 = vld [vmem:[%s1234_s5 + $0x30] sm:$0xff]  ;;  %v152_v20 = vld [vmem:[%s1234_s5 + $0x38] sm:$0xff]  ;;  %v153_v22 = vld [vmem:[%s1234_s5 + $0x40] sm:$0xff] }
  0x1d   : > { %v167_v19 = vld [vmem:[%s1234_s5 + $0xb0] sm:$0xff]  ;;  %v168_v21 = vld [vmem:[%s1234_s5 + $0xb8] sm:$0xff]  ;;  %v169_v23 = vld [vmem:[%s1234_s5 + $0xc0] sm:$0xff] }
  0x1e   : > { %991 = vmatmul.mubr.msk.f32.gmra.mrb[2].mxu0 %vm181_vm0, %v148_v12  ;;  %v154_v24 = vld [vmem:[%s1234_s5 + $0x48] sm:$0xff]  ;;  %v155_v26 = vld [vmem:[%s1234_s5 + $0x50] sm:$0xff]  ;;  %v156_v28 = vld [vmem:[%s1234_s5 + $0x58] sm:$0xff] }
  0x1f   : > { %1015 = vmatmul.mubr.msk.f32.gmra.mrb[2].mxu1 %vm181_vm0, %v164_v13  ;;  %993 = vmatprep.mubr.msk.f32.mxu0 %vm181_vm0, %v149_v14  ;;  %v170_v25 = vld [vmem:[%s1234_s5 + $0xc8] sm:$0xff]  ;;  %v171_v27 = vld [vmem:[%s1234_s5 + $0xd0] sm:$0xff]  ;;  %v172_v29 = vld [vmem:[%s1234_s5 + $0xd8] sm:$0xff] }
  0x20   : > { %1017 = vmatprep.mubr.msk.f32.mxu1 %vm181_vm0, %v165_v15  ;;  %v157_v30 = vld [vmem:[%s1234_s5 + $0x60] sm:$0xff]  ;;  %v158_v32 = vld [vmem:[%s1234_s5 + $0x68] sm:$0xff]  ;;  %v159_v34 = vld [vmem:[%s1234_s5 + $0x70] sm:$0xff] }
  0x21   : > { %v173_v31 = vld [vmem:[%s1234_s5 + $0xe0] sm:$0xff]  ;;  %v174_v33 = vld [vmem:[%s1234_s5 + $0xe8] sm:$0xff]  ;;  %v175_v35 = vld [vmem:[%s1234_s5 + $0xf0] sm:$0xff] }
  0x22   : > { %994 = vmatmul.mubr.msk.f32.gmra.mrb[4].mxu0 %vm181_vm0, %v150_v16  ;;  %v160_v36 = vld [vmem:[%s1234_s5 + $0x78] sm:$0xff] }
  0x23   : > { %1018 = vmatmul.mubr.msk.f32.gmra.mrb[4].mxu1 %vm181_vm0, %v166_v17  ;;  %996 = vmatprep.mubr.msk.f32.mxu0 %vm181_vm0, %v151_v18  ;;  %v176_v37 = vld [vmem:[%s1234_s5 + $0xf8] sm:$0xff] }
  0x24   : > { %1020 = vmatprep.mubr.msk.f32.mxu1 %vm181_vm0, %v167_v19 }
  0x26   : > { %997 = vmatmul.mubr.msk.f32.gmra.mrb[6].mxu0 %vm181_vm0, %v152_v20 }
  0x27   : > { %1021 = vmatmul.mubr.msk.f32.gmra.mrb[6].mxu1 %vm181_vm0, %v168_v21  ;;  %999 = vmatprep.mubr.msk.f32.mxu0 %vm181_vm0, %v153_v22 }
  0x28   : > { %1023 = vmatprep.mubr.msk.f32.mxu1 %vm181_vm0, %v169_v23 }
  0x2a   : > { %1000 = vmatmul.mubr.msk.f32.gmra.mrb[8].mxu0 %vm181_vm0, %v154_v24 }
  0x2b   : > { %1024 = vmatmul.mubr.msk.f32.gmra.mrb[8].mxu1 %vm181_vm0, %v170_v25  ;;  %1002 = vmatprep.mubr.msk.f32.mxu0 %vm181_vm0, %v155_v26 }
  0x2c   : > { %1026 = vmatprep.mubr.msk.f32.mxu1 %vm181_vm0, %v171_v27 }
  0x2e   : > { %1003 = vmatmul.mubr.msk.f32.gmra.mrb[10].mxu0 %vm181_vm0, %v156_v28 }
  0x2f   : > { %1027 = vmatmul.mubr.msk.f32.gmra.mrb[10].mxu1 %vm181_vm0, %v172_v29  ;;  %1005 = vmatprep.mubr.msk.f32.mxu0 %vm181_vm0, %v157_v30 }
  0x30   : > { %1029 = vmatprep.mubr.msk.f32.mxu1 %vm181_vm0, %v173_v31 }
  0x32   : > { %1006 = vmatmul.mubr.msk.f32.gmra.mrb[12].mxu0 %vm181_vm0, %v158_v32 }
  0x33   : > { %1030 = vmatmul.mubr.msk.f32.gmra.mrb[12].mxu1 %vm181_vm0, %v174_v33  ;;  %1008 = vmatprep.mubr.msk.f32.mxu0 %vm181_vm0, %v159_v34 }
  0x34   : > { %1032 = vmatprep.mubr.msk.f32.mxu1 %vm181_vm0, %v175_v35 }
  0x36   : > { %1009 = vmatmul.mubr.msk.f32.gmra.mrb[14].mxu0 %vm181_vm0, %v160_v36 }
  0x37   : > { %1033 = vmatmul.mubr.msk.f32.gmra.mrb[14].mxu1 %vm181_vm0, %v176_v37 }
  0xed   : > { %v989_v38 = vpop.f32.mrb[0].mxu0 }
  0xee   : > { %v1013_v39 = vpop.f32.mrb[0].mxu1  ;;  %v344_v40 = vpop.f32.mrb[1].mxu0 }
  0xef   : > { %v424_v41 = vpop.f32.mrb[1].mxu1  ;;  %v851_v42 = vpack.c.bf16 %v989_v38, %v344_v40 }
  0xf0   : > { %v891_v43 = vpack.c.bf16 %v1013_v39, %v424_v41 }
  0xf1   : > { %852 = vst [vmem:[%s1303_s8] sm:$0xff] %v851_v42   ;;  %v992_v44 = vpop.f32.mrb[2].mxu0 }
  0xf2   : > { %935 = vst [vmem:[%s1303_s8 + $0x40] sm:$0xff] %v891_v43   ;;  %v1016_v45 = vpop.f32.mrb[2].mxu1  ;;  %v354_v46 = vpop.f32.mrb[3].mxu0 }
  0xf3   : > { %v434_v47 = vpop.f32.mrb[3].mxu1  ;;  %v856_v48 = vpack.c.bf16 %v992_v44, %v354_v46 }
  0xf4   : > { %v896_v49 = vpack.c.bf16 %v1016_v45, %v434_v47 }
  0xf5   : > { %928 = vst [vmem:[%s1303_s8 + $0x8] sm:$0xff] %v856_v48   ;;  %v995_v50 = vpop.f32.mrb[4].mxu0 }
  0xf6   : > { %936 = vst [vmem:[%s1303_s8 + $0x48] sm:$0xff] %v896_v49   ;;  %v1019_v51 = vpop.f32.mrb[4].mxu1  ;;  %v364_v52 = vpop.f32.mrb[5].mxu0 }
  0xf7   : > { %v444_v53 = vpop.f32.mrb[5].mxu1  ;;  %v861_v54 = vpack.c.bf16 %v995_v50, %v364_v52 }
  0xf8   : > { %v901_v55 = vpack.c.bf16 %v1019_v51, %v444_v53 }
  0xf9   : > { %929 = vst [vmem:[%s1303_s8 + $0x10] sm:$0xff] %v861_v54   ;;  %v998_v56 = vpop.f32.mrb[6].mxu0 }
  0xfa   : > { %937 = vst [vmem:[%s1303_s8 + $0x50] sm:$0xff] %v901_v55   ;;  %v1022_v57 = vpop.f32.mrb[6].mxu1  ;;  %v374_v58 = vpop.f32.mrb[7].mxu0 }
  0xfb   : > { %v454_v59 = vpop.f32.mrb[7].mxu1  ;;  %v866_v60 = vpack.c.bf16 %v998_v56, %v374_v58 }
  0xfc   : > { %v906_v61 = vpack.c.bf16 %v1022_v57, %v454_v59 }
  0xfd   : > { %930 = vst [vmem:[%s1303_s8 + $0x18] sm:$0xff] %v866_v60   ;;  %v1001_v62 = vpop.f32.mrb[8].mxu0 }
  0xfe   : > { %938 = vst [vmem:[%s1303_s8 + $0x58] sm:$0xff] %v906_v61   ;;  %v1025_v63 = vpop.f32.mrb[8].mxu1  ;;  %v384_v0 = vpop.f32.mrb[9].mxu0 }
  0xff   : > { %v464_v1 = vpop.f32.mrb[9].mxu1  ;;  %v871_v2 = vpack.c.bf16 %v1001_v62, %v384_v0 }
 0x100   : > { %v911_v3 = vpack.c.bf16 %v1025_v63, %v464_v1 }
 0x101   : > { %931 = vst [vmem:[%s1303_s8 + $0x20] sm:$0xff] %v871_v2   ;;  %v1004_v4 = vpop.f32.mrb[10].mxu0 }
 0x102   : > { %939 = vst [vmem:[%s1303_s8 + $0x60] sm:$0xff] %v911_v3   ;;  %v1028_v5 = vpop.f32.mrb[10].mxu1  ;;  %v394_v6 = vpop.f32.mrb[11].mxu0 }
 0x103   : > { %v474_v7 = vpop.f32.mrb[11].mxu1  ;;  %v876_v8 = vpack.c.bf16 %v1004_v4, %v394_v6 }
 0x104   : > { %v916_v9 = vpack.c.bf16 %v1028_v5, %v474_v7 }
 0x105   : > { %932 = vst [vmem:[%s1303_s8 + $0x28] sm:$0xff] %v876_v8   ;;  %v1007_v10 = vpop.f32.mrb[12].mxu0 }
 0x106   : > { %940 = vst [vmem:[%s1303_s8 + $0x68] sm:$0xff] %v916_v9   ;;  %v1031_v11 = vpop.f32.mrb[12].mxu1  ;;  %v404_v12 = vpop.f32.mrb[13].mxu0 }
 0x107   : > { %v484_v13 = vpop.f32.mrb[13].mxu1  ;;  %v881_v14 = vpack.c.bf16 %v1007_v10, %v404_v12 }
 0x108   : > { %v921_v15 = vpack.c.bf16 %v1031_v11, %v484_v13 }
 0x109   : > { %933 = vst [vmem:[%s1303_s8 + $0x30] sm:$0xff] %v881_v14   ;;  %v1010_v16 = vpop.f32.mrb[14].mxu0 }
 0x10a   : > { %941 = vst [vmem:[%s1303_s8 + $0x70] sm:$0xff] %v921_v15   ;;  %v1034_v17 = vpop.f32.mrb[14].mxu1  ;;  %v414_v18 = vpop.f32.mrb[15].mxu0 }
 0x10b   : > { %v494_v19 = vpop.f32.mrb[15].mxu1  ;;  %v886_v20 = vpack.c.bf16 %v1010_v16, %v414_v18 }
 0x10c   : > { %v926_v21 = vpack.c.bf16 %v1034_v17, %v494_v19 }
 0x10d   : > { %934 = vst [vmem:[%s1303_s8 + $0x38] sm:$0xff] %v886_v20  }
 0x10e   : > { %942 = vst [vmem:[%s1303_s8 + $0x78] sm:$0xff] %v926_v21  }
 0x10f   : > { %1101 = shalt.err (!%p1098_p3)
}
 0x110   : > { %s1102_s27 = scalar_lea.hbm %s1324_s22, 2048  ;;  %s1106_s30 = scalar_lea.hbm %s1375_s2, 4096 }
 0x111   : > { %p1103_p4 = scmp.ne.s32.totalorder %s1324_s22, %s1102_s27  ;;  %p1107_p9 = scmp.lt.u32.totalorder %s1324_s22, %s1375_s2 }
 0x112   : > { %p1108_p10 = scmp.lt.u32.totalorder %s1106_s30, %s1102_s27  ;;  %p1110_p12 = scmp.lt.u32.totalorder %s1102_s27, %s1324_s22 }
 0x113   : > { %p1104_p7 = pnand %p1103_p4, %p1208_p5 }
 0x114   : > { %p1109_p11 = por %p1108_p10, %p1107_p9 }
 0x115   : > { %p1105_p8 = pneg %p1104_p7 }
 0x116   : > { %p1111_p13 = por %p1110_p12, %p1109_p11 }
 0x118   : > { %p1112_p0 = pnand %p1111_p13, %p1105_p8 }
 0x11a   : > { %1115 = shalt.err (!%p1112_p0)
}
 0x11b   : > { %s1153_s5 = smov 64   ;;  %s1154_s6 = smov 4  }
 0x11c   : > { %1047 = dma.vmem_to_hbm [thread:$0]  (%p1208_p5), %s1326_s16, 2048, %s1324_s22, %s1332_s13, %s1153_s5, %s1153_s5, %s1154_s6  }
 0x11d PF: > { %p1053_p1 = scmp.ge.s32.totalorder %s1150_s12, 2  ;;  %s692_s7 = sand.u32 1, %s1138_s9  }
 0x11e   : > { %s693_s8 = scalar_lea.sflag [#allocation3], %s692_s7 }
 0x11f   : > { %p1050_p2 = pnand %p1053_p1, %p1212_p6 }
 0x121   : > { %1133 = dma.done.wait (!%p1050_p2), %s693_s8, 2048  }
 0x122   : > { %1135 = vsyncadd (!%p1050_p2), %s693_s8, 4294965248  ;;  %p12_p3 = scmp.ge.s32.totalorder %s1195_s15, 4   ;;  %s1378_s9 = smov %s1142_s10 }
 0x123   : > { %s1379_s10 = smov %s1146_s11  ;;  %s1380_s11 = smov %s1206_s18 }
 0x124   : > { %s1381_s12 = smov %s1195_s15  ;;  %14 = sbr.rel (!%p12_p3) target bundleno = 3 (0x3), region = 63 }
 0x12b   :  { %698 = vsyncpa [#allocation3], 1 }
 0x12c   :  { %700 = vsyncpa [#allocation3 + $0x1], 1 }

</bundles_post_ra>
